<compile_context>
chip_gen: v7x
topology: tpu7x:2x2x1
jax: 0.10.0
libtpu: 0.0.40
codegen_flags: <defaults>
</compile_context>

<pallas_src>
import functools

import jax
import jax.numpy as jnp
from jax.experimental import pallas as pl
from jax.experimental.pallas import tpu as pltpu


def _round_up(x, m):
    return (x + m - 1) // m * m


def _pad2d(x, rows, cols, dtype):
    """Zero-pad (and cast) a 2-D array to (rows, cols); no-op copy avoided when already aligned."""
    r, c = x.shape
    if r == rows and c == cols and x.dtype == dtype:
        return x
    return jnp.zeros((rows, cols), dtype).at[:r, :c].set(x.astype(dtype))


def _sage_layer_kernel(apply_relu, a_ref, hsrc_ref, hdst_ref, ws_ref, wn_ref, b_ref,
                       o_ref, acc_ref):
    """Grid = (dst_row_tiles, k_tiles). Accumulate A @ h_src over k; finalize at last k."""
    k = pl.program_id(1)

    @pl.when(k == 0)
    def _():
        acc_ref[...] = jnp.zeros_like(acc_ref)

    # mean aggregation: A is row-normalized; bf16 operands, f32 accumulation on the MXU.
    acc_ref[...] += jnp.dot(a_ref[...], hsrc_ref[...], preferred_element_type=jnp.float32)

    @pl.when(k == pl.num_programs(1) - 1)
    def _():
        h_neigh = acc_ref[...].astype(jnp.bfloat16)
        out = jnp.dot(hdst_ref[...], ws_ref[...], preferred_element_type=jnp.float32)
        out = out + jnp.dot(h_neigh, wn_ref[...], preferred_element_type=jnp.float32)
        out = out + b_ref[...]
        if apply_relu:
            out = jnp.maximum(out, 0.0)
        o_ref[...] = out.astype(o_ref.dtype)


def sage_layer(a, h_src, h_dst, w_neigh, w_self, bias, *, apply_relu,
               out_dtype=jnp.float32, tm_max=256, tk_max=512):
    """One SAGEConv('mean') layer: out = h_dst @ W_self + (A @ h_src) @ W_neigh + bias."""
    n_dst, n_src = a.shape
    f_in = h_src.shape[1]
    f_out = w_self.shape[1]

    # Lane/sublane aligned padded sizes (bf16 -> sublane mult of 16, lane mult of 128).
    fp_in = _round_up(f_in, 128)
    fp_out = _round_up(f_out, 128)
    tm = min(tm_max, _round_up(n_dst, 16))
    tk = min(tk_max, _round_up(n_src, 128))
    n_dst_p = _round_up(n_dst, tm)
    n_src_p = _round_up(n_src, tk)

    bf16 = jnp.bfloat16
    a_p = _pad2d(a, n_dst_p, n_src_p, bf16)
    hs_p = _pad2d(h_src, n_src_p, fp_in, bf16)
    hd_p = _pad2d(h_dst, n_dst_p, fp_in, bf16)
    # Padded weight rows/cols stay zero so padded features cannot leak into outputs.
    ws_p = _pad2d(w_self, fp_in, fp_out, bf16)
    wn_p = _pad2d(w_neigh, fp_in, fp_out, bf16)
    b_p = _pad2d(bias.reshape(1, -1), 1, fp_out, jnp.float32)

    grid = (n_dst_p // tm, n_src_p // tk)
    kernel = functools.partial(_sage_layer_kernel, apply_relu)

    out = pl.pallas_call(
        kernel,
        out_shape=jax.ShapeDtypeStruct((n_dst_p, fp_out), out_dtype),
        grid_spec=pltpu.PrefetchScalarGridSpec(
            num_scalar_prefetch=0,
            grid=grid,
            in_specs=[
                pl.BlockSpec((tm, tk), lambda i, k: (i, k)),          # A tile
                pl.BlockSpec((tk, fp_in), lambda i, k: (k, 0)),       # h_src K-tile
                pl.BlockSpec((tm, fp_in), lambda i, k: (i, 0)),       # h_dst tile (const over k)
                pl.BlockSpec((fp_in, fp_out), lambda i, k: (0, 0)),   # W_self (VMEM-resident)
                pl.BlockSpec((fp_in, fp_out), lambda i, k: (0, 0)),   # W_neigh (VMEM-resident)
                pl.BlockSpec((1, fp_out), lambda i, k: (0, 0)),       # bias (VMEM-resident)
            ],
            out_specs=pl.BlockSpec((tm, fp_out), lambda i, k: (i, 0)),
            scratch_shapes=[pltpu.VMEM((tm, fp_in), jnp.float32)],
        ),
        compiler_params=pltpu.CompilerParams(
            dimension_semantics=("parallel", "arbitrary"),
        ),
    )(a_p, hs_p, hd_p, ws_p, wn_p, b_p)
    return out[:n_dst, :f_out]


def sage_only_forward(blocks, h, params):
    """Mirrors SAGE_ONLY.forward for n_layers >= 2 (activation=ReLU, eval-mode dropout)."""
    n_layers = len(params)
    for l, (a, p) in enumerate(zip(blocks, params)):
        n_dst = a.shape[0]
        h_dst = h[:n_dst]
        last = l == n_layers - 1
        h = sage_layer(
            a, h, h_dst, p["w_neigh"], p["w_self"], p["bias"],
            apply_relu=not last,
            out_dtype=jnp.float32 if last else jnp.bfloat16,
        )
        # dropout(p) in eval mode == identity
    return h


def sage_only_reference(blocks, h, params):
    """Pure-JAX f32 reference for tolerance checking."""
    n_layers = len(params)
    for l, (a, p) in enumerate(zip(blocks, params)):
        n_dst = a.shape[0]
        h_dst = h[:n_dst]
        h = h_dst @ p["w_self"] + (a @ h) @ p["w_neigh"] + p["bias"]
        if l != n_layers - 1:
            h = jnp.maximum(h, 0.0)
    return h


def _make_block(key, n_dst, n_src):
    # dense binary connectivity, row-normalized by clamped in-degree (mean aggregator)
    m = jax.random.bernoulli(key, 0.3, (n_dst, n_src)).astype(jnp.float32)
    deg = jnp.maximum(m.sum(axis=1, keepdims=True), 1.0)
    return m / deg


def _init_layer(key, f_in, f_out):
    k1, k2, k3 = jax.random.split(key, 3)
    scale = 1.0 / jnp.sqrt(jnp.float32(f_in))
    return {
        "w_self": jax.random.normal(k1, (f_in, f_out), jnp.float32) * scale,
        "w_neigh": jax.random.normal(k2, (f_in, f_out), jnp.float32) * scale,
        "bias": jax.random.normal(k3, (1, f_out), jnp.float32) * 0.01,
    }


if __name__ == "__main__":
    # small synthetic config: n_layers=2, in_feats=16, n_hidden=32, n_classes=8
    in_feats, n_hidden, n_classes = 16, 32, 8
    n_src0, n_dst0, n_dst1 = 24, 16, 8  # block0: 24->16 nodes, block1: 16->8 nodes

    key = jax.random.PRNGKey(0)
    k_h, k_b0, k_b1, k_l0, k_l1 = jax.random.split(key, 5)

    h = jax.random.normal(k_h, (n_src0, in_feats), jnp.float32)
    blocks = [
        _make_block(k_b0, n_dst0, n_src0),
        _make_block(k_b1, n_dst1, n_dst0),
    ]
    params = [
        _init_layer(k_l0, in_feats, n_hidden),
        _init_layer(k_l1, n_hidden, n_classes),
    ]

    out = jax.block_until_ready(sage_only_forward(blocks, h, params))
    assert out.shape == (n_dst1, n_classes), out.shape

    ref = jax.block_until_ready(sage_only_reference(blocks, h, params))
    max_err = float(jnp.max(jnp.abs(out - ref)))
    assert jnp.allclose(out, ref, atol=0.15, rtol=0.05), max_err

    print("KERNEL_OK")
</pallas_src>

<mosaic_0001>
module attributes {stable_mosaic.version = 11 : i64} {
  func.func @_sage_layer_kernel(%arg0: i32, %arg1: i32, %arg2: memref<16x128xbf16, #tpu.memory_space<vmem>>, %arg3: memref<128x128xbf16, #tpu.memory_space<vmem>>, %arg4: memref<16x128xbf16, #tpu.memory_space<vmem>>, %arg5: memref<128x128xbf16, #tpu.memory_space<vmem>>, %arg6: memref<128x128xbf16, #tpu.memory_space<vmem>>, %arg7: memref<1x128xf32, #tpu.memory_space<vmem>>, %arg8: memref<16x128xbf16, #tpu.memory_space<vmem>>, %arg9: memref<16x128xf32, #tpu.memory_space<vmem>>) attributes {dimension_semantics = [#tpu.dimension_semantics<parallel>, #tpu.dimension_semantics<arbitrary>], iteration_bounds = array<i64: 1, 1>, scalar_prefetch = 0 : i64, scratch_operands = 1 : i64, tpu.core_type = #tpu.core_type<tc>, window_params = [{transform_indices = @transform_0, window_bounds = array<i64: 16, 128>}, {transform_indices = @transform_1, window_bounds = array<i64: 128, 128>}, {transform_indices = @transform_2, window_bounds = array<i64: 16, 128>}, {pipeline_mode = #tpu.pipeline_mode<synchronous>, transform_indices = @transform_3, window_bounds = array<i64: 128, 128>}, {pipeline_mode = #tpu.pipeline_mode<synchronous>, transform_indices = @transform_4, window_bounds = array<i64: 128, 128>}, {pipeline_mode = #tpu.pipeline_mode<synchronous>, transform_indices = @transform_5, window_bounds = array<i64: 1, 128>}, {transform_indices = @transform_6, window_bounds = array<i64: 16, 128>}]} {
    %c0_i32 = arith.constant 0 : i32
    %0 = arith.cmpi eq, %arg1, %c0_i32 : i32
    %1 = arith.extui %0 : i1 to i32
    %c0_i32_0 = arith.constant 0 : i32
    %2 = arith.cmpi ne, %1, %c0_i32_0 : i32
    scf.if %2 {
      %cst_10 = arith.constant 0.000000e+00 : f32
      %12 = vector.broadcast %cst_10 : f32 to vector<16x128xf32>
      %c0_11 = arith.constant 0 : index
      %c0_12 = arith.constant 0 : index
      %13 = vector.load %arg9[%c0_11, %c0_12] : memref<16x128xf32, #tpu.memory_space<vmem>>, vector<16x128xf32>
      tpu.vector_store %arg9[%c0_11, %c0_12], %12 {strides = array<i32>} : memref<16x128xf32, #tpu.memory_space<vmem>>, vector<16x128xf32>,
    } else {
    }
    %c0 = arith.constant 0 : index
    %c0_1 = arith.constant 0 : index
    %3 = vector.load %arg9[%c0, %c0_1] : memref<16x128xf32, #tpu.memory_space<vmem>>, vector<16x128xf32>
    %c0_2 = arith.constant 0 : index
    %c0_3 = arith.constant 0 : index
    %4 = vector.load %arg2[%c0_2, %c0_3] : memref<16x128xbf16, #tpu.memory_space<vmem>>, vector<16x128xbf16>
    %c0_4 = arith.constant 0 : index
    %c0_5 = arith.constant 0 : index
    %5 = vector.load %arg3[%c0_4, %c0_5] : memref<128x128xbf16, #tpu.memory_space<vmem>>, vector<128x128xbf16>
    %cst = arith.constant dense<0.000000e+00> : vector<16x128xf32>
    %6 = tpu.matmul %4, %5, %cst {dimension_numbers = #tpu.dot_dimension_numbers<[1], [0], [0], [1], [0, 0, 1, 1], [], []>} : vector<16x128xbf16>, vector<128x128xbf16>, vector<16x128xf32> -> vector<16x128xf32>
    %7 = arith.addf %3, %6 : vector<16x128xf32>
    %c0_6 = arith.constant 0 : index
    %c0_7 = arith.constant 0 : index
    %8 = vector.load %arg9[%c0_6, %c0_7] : memref<16x128xf32, #tpu.memory_space<vmem>>, vector<16x128xf32>
    tpu.vector_store %arg9[%c0_6, %c0_7], %7 {strides = array<i32>} : memref<16x128xf32, #tpu.memory_space<vmem>>, vector<16x128xf32>,
    %c0_i32_8 = arith.constant 0 : i32
    %9 = arith.cmpi eq, %arg1, %c0_i32_8 : i32
    %10 = arith.extui %9 : i1 to i32
    %c0_i32_9 = arith.constant 0 : i32
    %11 = arith.cmpi ne, %10, %c0_i32_9 : i32
    scf.if %11 {
      %c0_10 = arith.constant 0 : index
      %c0_11 = arith.constant 0 : index
      %12 = vector.load %arg9[%c0_10, %c0_11] : memref<16x128xf32, #tpu.memory_space<vmem>>, vector<16x128xf32>
      %13 = arith.truncf %12 : vector<16x128xf32> to vector<16x128xbf16>
      %c0_12 = arith.constant 0 : index
      %c0_13 = arith.constant 0 : index
      %14 = vector.load %arg4[%c0_12, %c0_13] : memref<16x128xbf16, #tpu.memory_space<vmem>>, vector<16x128xbf16>
      %c0_14 = arith.constant 0 : index
      %c0_15 = arith.constant 0 : index
      %15 = vector.load %arg5[%c0_14, %c0_15] : memref<128x128xbf16, #tpu.memory_space<vmem>>, vector<128x128xbf16>
      %cst_16 = arith.constant dense<0.000000e+00> : vector<16x128xf32>
      %16 = tpu.matmul %14, %15, %cst_16 {dimension_numbers = #tpu.dot_dimension_numbers<[1], [0], [0], [1], [0, 0, 1, 1], [], []>} : vector<16x128xbf16>, vector<128x128xbf16>, vector<16x128xf32> -> vector<16x128xf32>
      %c0_17 = arith.constant 0 : index
      %c0_18 = arith.constant 0 : index
      %17 = vector.load %arg6[%c0_17, %c0_18] : memref<128x128xbf16, #tpu.memory_space<vmem>>, vector<128x128xbf16>
      %cst_19 = arith.constant dense<0.000000e+00> : vector<16x128xf32>
      %18 = tpu.matmul %13, %17, %cst_19 {dimension_numbers = #tpu.dot_dimension_numbers<[1], [0], [0], [1], [0, 0, 1, 1], [], []>} : vector<16x128xbf16>, vector<128x128xbf16>, vector<16x128xf32> -> vector<16x128xf32>
      %19 = arith.addf %16, %18 : vector<16x128xf32>
      %c0_20 = arith.constant 0 : index
      %c0_21 = arith.constant 0 : index
      %20 = vector.load %arg7[%c0_20, %c0_21] : memref<1x128xf32, #tpu.memory_space<vmem>>, vector<1x128xf32>
      %21 = vector.broadcast %20 : vector<1x128xf32> to vector<16x128xf32>
      %22 = arith.addf %19, %21 : vector<16x128xf32>
      %cst_22 = arith.constant 0.000000e+00 : f32
      %23 = vector.broadcast %cst_22 : f32 to vector<16x128xf32>
      %24 = arith.maximumf %22, %23 : vector<16x128xf32>
      %25 = arith.truncf %24 : vector<16x128xf32> to vector<16x128xbf16>
      %c0_23 = arith.constant 0 : index
      %c0_24 = arith.constant 0 : index
      %26 = vector.load %arg8[%c0_23, %c0_24] : memref<16x128xbf16, #tpu.memory_space<vmem>>, vector<16x128xbf16>
      tpu.vector_store %arg8[%c0_23, %c0_24], %25 {strides = array<i32>} : memref<16x128xbf16, #tpu.memory_space<vmem>>, vector<16x128xbf16>,
    } else {
    }
    return
  }
  func.func @transform_0(%arg0: i32, %arg1: i32) -> (i32, i32) {
    %c0_i32 = arith.constant 0 : i32
    return %arg0, %arg1 : i32, i32
  }
  func.func @transform_1(%arg0: i32, %arg1: i32) -> (i32, i32) {
    %c0_i32 = arith.constant 0 : i32
    %c0_i32_0 = arith.constant 0 : i32
    return %arg1, %c0_i32 : i32, i32
  }
  func.func @transform_2(%arg0: i32, %arg1: i32) -> (i32, i32) {
    %c0_i32 = arith.constant 0 : i32
    %c0_i32_0 = arith.constant 0 : i32
    return %arg0, %c0_i32 : i32, i32
  }
  func.func @transform_3(%arg0: i32, %arg1: i32) -> (i32, i32) {
    %c0_i32 = arith.constant 0 : i32
    %c0_i32_0 = arith.constant 0 : i32
    %c0_i32_1 = arith.constant 0 : i32
    return %c0_i32, %c0_i32_0 : i32, i32
  }
  func.func @transform_4(%arg0: i32, %arg1: i32) -> (i32, i32) {
    %c0_i32 = arith.constant 0 : i32
    %c0_i32_0 = arith.constant 0 : i32
    %c0_i32_1 = arith.constant 0 : i32
    return %c0_i32, %c0_i32_0 : i32, i32
  }
  func.func @transform_5(%arg0: i32, %arg1: i32) -> (i32, i32) {
    %c0_i32 = arith.constant 0 : i32
    %c0_i32_0 = arith.constant 0 : i32
    %c0_i32_1 = arith.constant 0 : i32
    return %c0_i32, %c0_i32_0 : i32, i32
  }
  func.func @transform_6(%arg0: i32, %arg1: i32) -> (i32, i32) {
    %c0_i32 = arith.constant 0 : i32
    %c0_i32_0 = arith.constant 0 : i32
    return %arg0, %c0_i32 : i32, i32
  }
}

</mosaic_0001>

<bundles_post_ra>
// kernel: tpu_custom_call.1
= control target key start
LH: loop header
LB: loop body
LE: loop exit
PB: predicated region body
PF: predicated region fallthrough
CT: control target
= control target key end

     0   :  { %11 = vsyncpa [#allocation4], 0  ;;  %s963_s0 = inlined_call_operand.hbm [shape: bf16[16,128], index: 0, kind: input, shape index: {}]   ;;  %s964_s1 = inlined_call_operand.hbm [shape: bf16[128,128], index: 1, kind: input, shape index: {}]   ;;  %s965_s2 = inlined_call_operand.hbm [shape: bf16[16,128], index: 2, kind: input, shape index: {}]   ;;  %s966_s3 = inlined_call_operand.hbm [shape: bf16[128,128], index: 3, kind: input, shape index: {}]   ;;  %s967_s4 = inlined_call_operand.hbm [shape: bf16[128,128], index: 4, kind: input, shape index: {}]   ;;  %s968_s5 = inlined_call_operand.vmem [shape: f32[1,128], index: 5, kind: input, shape index: {}]   ;;  %s969_s6 = inlined_call_operand.hbm [shape: bf16[16,128], index: 6, kind: output, shape index: {}]  }
   0x1   :  { %12 = vsyncpa [#allocation7], 0 }
   0x2   :  { %13 = vsyncpa [#allocation10], 0 }
   0x3   :  { %14 = vsyncpa [#allocation5], 0  ;;  %s781_s21 = smov [#allocation6]   ;;  %s782_s23 = smov [#allocation9]  }
   0x4   :  { %s32_s22 = sshll.u32 %s781_s21, 4  ;;  %s56_s24 = sshll.u32 %s782_s23, 4  ;;  %s33_s22 = int_to_ptr.vmem [resolvable:$true] %s32_s22  ;;  %s826_s24 = int_to_ptr.vmem [resolvable:$true] %s56_s24 }
   0x5   :  { %s641_s27 = scalar_lea.hbm %s964_s1, 1024 }
   0x6   :  { %p642_p0 = scmp.ne.s32.totalorder %s964_s1, %s641_s27  ;;  %p645_p1 = scmp.lt.u32.totalorder %s641_s27, %s964_s1 }
   0x8   :  { %p647_p2 = pnand %p645_p1, %p642_p0 }
   0xa   :  { %650 = shalt.err (!%p647_p2)
}
   0xb   :  { %s651_s8 = scalar_lea.vmem %s33_s22, 1024  ;;  %p656_p4 = scmp.lt.s32.totalorder %s33_s22, %s33_s22 }
   0xc   :  { %p652_p3 = scmp.ne.s32.totalorder %s33_s22, %s651_s8  ;;  %p657_p5 = scmp.lt.s32.totalorder %s651_s8, %s651_s8 }
   0xe   :  { %p658_p6 = por %p657_p5, %p656_p4 }
  0x10   :  { %p659_p7 = pnand %p658_p6, %p652_p3 }
  0x12   :  { %662 = shalt.err (!%p659_p7)
}
  0x13   :  { %s783_s9 = smov 64   ;;  %s784_s10 = smov 4  }
  0x14   :  { %38 = dma.hbm_to_vmem [thread:$0]  %s964_s1, 1024, %s33_s22, [#allocation7], %s783_s9, %s783_s9, %s784_s10  }
  0x15   :  { %s663_s15 = scalar_lea.hbm %s966_s3, 1024 }
  0x16   :  { %p664_p8 = scmp.ne.s32.totalorder %s966_s3, %s663_s15  ;;  %p667_p9 = scmp.lt.u32.totalorder %s663_s15, %s966_s3 }
  0x18   :  { %p669_p10 = pnand %p667_p9, %p664_p8 }
  0x1a   :  { %672 = shalt.err (!%p669_p10)
}
  0x1b   :  { %s673_s20 = scalar_lea.vmem %s826_s24, 1024  ;;  %p678_p12 = scmp.lt.s32.totalorder %s826_s24, %s826_s24 }
  0x1c   :  { %p674_p11 = scmp.ne.s32.totalorder %s826_s24, %s673_s20  ;;  %p679_p13 = scmp.lt.s32.totalorder %s673_s20, %s673_s20 }
  0x1e   :  { %p680_p0 = por %p679_p13, %p678_p12 }
  0x20   :  { %p681_p1 = pnand %p680_p0, %p674_p11 }
  0x22   :  { %684 = shalt.err (!%p681_p1)
}
  0x23   :  { %62 = dma.hbm_to_vmem [thread:$0]  %s966_s3, 1024, %s826_s24, [#allocation10], %s783_s9, %s783_s9, %s784_s10  }
  0x24   :  { %s785_s22 = smov [#allocation3]   ;;  %s786_s25 = smov [#allocation8]  }
  0x25   :  { %s20_s23 = sshll.u32 %s785_s22, 4  ;;  %s44_s26 = sshll.u32 %s786_s25, 4  ;;  %s21_s23 = int_to_ptr.vmem [resolvable:$true] %s20_s23  ;;  %s863_s26 = int_to_ptr.vmem [resolvable:$true] %s44_s26 }
  0x26   :  { %s685_s29 = scalar_lea.hbm %s963_s0, 128 }
  0x27   :  { %p686_p2 = scmp.ne.s32.totalorder %s963_s0, %s685_s29  ;;  %p689_p3 = scmp.lt.u32.totalorder %s685_s29, %s963_s0 }
  0x29   :  { %p691_p4 = pnand %p689_p3, %p686_p2 }
  0x2b   :  { %694 = shalt.err (!%p691_p4)
}
  0x2c   :  { %s695_s3 = scalar_lea.vmem %s21_s23, 128  ;;  %p700_p6 = scmp.lt.s32.totalorder %s21_s23, %s21_s23 }
  0x2d   :  { %p696_p5 = scmp.ne.s32.totalorder %s21_s23, %s695_s3  ;;  %p701_p7 = scmp.lt.s32.totalorder %s695_s3, %s695_s3 }
  0x2f   :  { %p702_p8 = por %p701_p7, %p700_p6 }
  0x31   :  { %p703_p9 = pnand %p702_p8, %p696_p5 }
  0x33   :  { %706 = shalt.err (!%p703_p9)
}
  0x34   :  { %26 = dma.hbm_to_vmem [thread:$0]  %s963_s0, 128, %s21_s23, [#allocation4], %s783_s9, %s783_s9, %s784_s10  }
  0x35   :  { %s707_s15 = scalar_lea.hbm %s965_s2, 128 }
  0x36   :  { %p708_p10 = scmp.ne.s32.totalorder %s965_s2, %s707_s15  ;;  %p711_p11 = scmp.lt.u32.totalorder %s707_s15, %s965_s2 }
  0x38   :  { %p713_p12 = pnand %p711_p11, %p708_p10 }
  0x3a   :  { %716 = shalt.err (!%p713_p12)
}
  0x3b   :  { %s717_s20 = scalar_lea.vmem %s863_s26, 128  ;;  %p722_p0 = scmp.lt.s32.totalorder %s863_s26, %s863_s26 }
  0x3c   :  { %p718_p13 = scmp.ne.s32.totalorder %s863_s26, %s717_s20  ;;  %p723_p1 = scmp.lt.s32.totalorder %s717_s20, %s717_s20 }
  0x3e   :  { %p724_p2 = por %p723_p1, %p722_p0 }
  0x40   :  { %p725_p3 = pnand %p724_p2, %p718_p13 }
  0x42   :  { %728 = shalt.err (!%p725_p3)
}
  0x43   :  { %50 = dma.hbm_to_vmem [thread:$0]  %s965_s2, 128, %s863_s26, [#allocation7], %s783_s9, %s783_s9, %s784_s10  }
  0x44   :  { %s787_s21 = smov [#allocation11]   ;;  %s729_s27 = scalar_lea.hbm %s967_s4, 1024 }
  0x45   :  { %s68_s22 = sshll.u32 %s787_s21, 4  ;;  %p730_p4 = scmp.ne.s32.totalorder %s967_s4, %s729_s27  ;;  %s69_s22 = int_to_ptr.vmem [resolvable:$true] %s68_s22 }
  0x46   :  { %p733_p5 = scmp.lt.u32.totalorder %s729_s27, %s967_s4 }
  0x48   :  { %p735_p6 = pnand %p733_p5, %p730_p4 }
  0x4a   :  { %738 = shalt.err (!%p735_p6)
}
  0x4b   :  { %s739_s8 = scalar_lea.vmem %s69_s22, 1024  ;;  %p744_p8 = scmp.lt.s32.totalorder %s69_s22, %s69_s22 }
  0x4c   :  { %p740_p7 = scmp.ne.s32.totalorder %s69_s22, %s739_s8  ;;  %p745_p9 = scmp.lt.s32.totalorder %s739_s8, %s739_s8 }
  0x4e   :  { %p746_p10 = por %p745_p9, %p744_p8 }
  0x50   :  { %p747_p11 = pnand %p746_p10, %p740_p7 }
  0x52   :  { %750 = shalt.err (!%p747_p11)
}
  0x53   :  { %74 = dma.hbm_to_vmem [thread:$0]  %s967_s4, 1024, %s69_s22, [#allocation10], %s783_s9, %s783_s9, %s784_s10  }
  0x54   :  { %773 = dma.done.wait [#allocation4], 128  }
  0x55   :  { %774 = vsyncadd [#allocation4], 4294967168 }
  0x56   :  { %775 = dma.done.wait [#allocation7], 1152  }
  0x57   :  { %776 = vsyncadd [#allocation7], 4294966144 }
  0x58   :  { %777 = dma.done.wait [#allocation10], 2048  }
  0x59   :  { %778 = vsyncadd [#allocation10], 4294965248  ;;  %v788_v0 = vmov 0.0   ;;  %vm789_vm0 = vmmov 0   ;;  %v615_v1 = vld [vmem:[#allocation6] sm:$0xff]   ;;  %v616_v2 = vld [vmem:[#allocation6 + $0x8] sm:$0xff]  }
  0x5a   :  { %545 = vmatprep.subr.bf16.mxu0 %v788_v0  ;;  %561 = vmatprep.mubr.msk.bf16.mxu0 %vm789_vm0, %v788_v0  ;;  %v617_v3 = vld [vmem:[#allocation6 + $0x10] sm:$0xff]   ;;  %v618_v4 = vld [vmem:[#allocation6 + $0x18] sm:$0xff]   ;;  %v625_v5 = vld [vmem:[#allocation11] sm:$0xff]   ;;  %s790_s3 = smov [#allocation12]  }
  0x5b   :  { %565 = vmatprep.subr.bf16.mxu1 %v788_v0  ;;  %581 = vmatprep.mubr.msk.bf16.mxu1 %vm789_vm0, %v788_v0  ;;  %v627_v6 = vld [vmem:[#allocation11 + $0x8] sm:$0xff]   ;;  %v619_v7 = vld [vmem:[#allocation6 + $0x20] sm:$0xff]   ;;  %v629_v8 = vld [vmem:[#allocation11 + $0x10] sm:$0xff]   ;;  %s468_s24 = sshll.u32 %s790_s3, 4  ;;  %s469_s24 = int_to_ptr.vmem [resolvable:$true] %s468_s24 }
  0x5c   :  { %546 = vmatpush3.bf16.msra.mxu0 %v615_v1  ;;  %566 = vmatpush3.bf16.msra.mxu1 %v625_v5  ;;  %v620_v9 = vld [vmem:[#allocation6 + $0x28] sm:$0xff]   ;;  %v631_v10 = vld [vmem:[#allocation11 + $0x18] sm:$0xff]   ;;  %v621_v11 = vld [vmem:[#allocation6 + $0x30] sm:$0xff]   ;;  %s751_s12 = scalar_lea.vmem %s469_s24, 128  ;;  %p756_p13 = scmp.lt.s32.totalorder %s469_s24, %s469_s24 }
  0x5d   :  { %547 = vmatprep.subr.bf16.mxu0 %v788_v0  ;;  %567 = vmatprep.subr.bf16.mxu1 %v788_v0  ;;  %v633_v12 = vld [vmem:[#allocation11 + $0x20] sm:$0xff]   ;;  %v622_v13 = vld [vmem:[#allocation6 + $0x38] sm:$0xff]   ;;  %v635_v14 = vld [vmem:[#allocation11 + $0x28] sm:$0xff]   ;;  %p752_p12 = scmp.ne.s32.totalorder %s469_s24, %s751_s12  ;;  %p757_p0 = scmp.lt.s32.totalorder %s751_s12, %s751_s12 }
  0x5e   :  { %v623_v15 = vld [vmem:[#allocation3] sm:$0xff]   ;;  %v624_v16 = vld [vmem:[#allocation9] sm:$0xff]   ;;  %v626_v18 = vld [vmem:[#allocation9 + $0x8] sm:$0xff]  }
  0x5f   :  { %v637_v17 = vld [vmem:[#allocation11 + $0x30] sm:$0xff]   ;;  %v630_v20 = vld [vmem:[#allocation9 + $0x18] sm:$0xff]   ;;  %v632_v21 = vld [vmem:[#allocation9 + $0x20] sm:$0xff]   ;;  %p758_p1 = por %p757_p0, %p756_p13 }
  0x60   :  { %548 = vmatpush3.bf16.msra.mxu0 %v616_v2  ;;  %568 = vmatpush3.bf16.msra.mxu1 %v627_v6  ;;  %v628_v19 = vld [vmem:[#allocation9 + $0x10] sm:$0xff]   ;;  %v634_v22 = vld [vmem:[#allocation9 + $0x28] sm:$0xff]   ;;  %v638_v24 = vld [vmem:[#allocation9 + $0x38] sm:$0xff]  }
  0x61   :  { %549 = vmatprep.subr.bf16.mxu0 %v788_v0  ;;  %569 = vmatprep.subr.bf16.mxu1 %v788_v0  ;;  %v636_v23 = vld [vmem:[#allocation9 + $0x30] sm:$0xff]   ;;  %v639_v25 = vld [vmem:[#allocation11 + $0x38] sm:$0xff]   ;;  %p759_p2 = pnand %p758_p1, %p752_p12 }
  0x62   :  { %v640_v26 = vld [vmem:[#allocation8] sm:$0xff]   ;;  %v508_v37 = vld [vmem:[%s968_s5] ss:$0 sm:$0xff] }
  0x64   :  { %550 = vmatpush3.bf16.msra.mxu0 %v617_v3  ;;  %570 = vmatpush3.bf16.msra.mxu1 %v629_v8 }
  0x65   :  { %551 = vmatprep.subr.bf16.mxu0 %v788_v0  ;;  %571 = vmatprep.subr.bf16.mxu1 %v788_v0 }
  0x68   :  { %552 = vmatpush3.bf16.msra.mxu0 %v618_v4  ;;  %572 = vmatpush3.bf16.msra.mxu1 %v631_v10 }
  0x69   :  { %553 = vmatprep.subr.bf16.mxu0 %v788_v0  ;;  %573 = vmatprep.subr.bf16.mxu1 %v788_v0 }
  0x6c   :  { %554 = vmatpush3.bf16.msra.mxu0 %v619_v7  ;;  %574 = vmatpush3.bf16.msra.mxu1 %v633_v12 }
  0x6d   :  { %555 = vmatprep.subr.bf16.mxu0 %v788_v0  ;;  %575 = vmatprep.subr.bf16.mxu1 %v788_v0 }
  0x70   :  { %556 = vmatpush3.bf16.msra.mxu0 %v620_v9  ;;  %576 = vmatpush3.bf16.msra.mxu1 %v635_v14 }
  0x71   :  { %557 = vmatprep.subr.bf16.mxu0 %v788_v0  ;;  %577 = vmatprep.subr.bf16.mxu1 %v788_v0 }
  0x74   :  { %558 = vmatpush3.bf16.msra.mxu0 %v621_v11  ;;  %578 = vmatpush3.bf16.msra.mxu1 %v637_v17 }
  0x75   :  { %559 = vmatprep.subr.bf16.mxu0 %v788_v0  ;;  %579 = vmatprep.subr.bf16.mxu1 %v788_v0 }
  0x78   :  { %560 = vmatpush3.bf16.msra.mxu0 %v622_v13  ;;  %580 = vmatpush3.bf16.msra.mxu1 %v639_v25 }
  0x79   :  { %585 = vmatprep.subr.bf16.mxu0 %v788_v0 }
  0x7b   :  { %562 = vmatmul.mubr.bf16.vlgmr.msra.gmra.mrb[0].mxu0 %v623_v15 }
  0x7c   :  { %586 = vmatpush3.bf16.msra.mxu0 %v624_v16  ;;  %601 = vmatprep.mubr.msk.bf16.mxu0 %vm789_vm0, %v788_v0 }
  0x7d   :  { %587 = vmatprep.subr.bf16.mxu0 %v788_v0 }
  0x80   :  { %588 = vmatpush3.bf16.msra.mxu0 %v626_v18 }
  0x81   :  { %589 = vmatprep.subr.bf16.mxu0 %v788_v0 }
  0x84   :  { %590 = vmatpush3.bf16.msra.mxu0 %v628_v19 }
  0x85   :  { %591 = vmatprep.subr.bf16.mxu0 %v788_v0 }
  0x88   :  { %592 = vmatpush3.bf16.msra.mxu0 %v630_v20 }
  0x89   :  { %593 = vmatprep.subr.bf16.mxu0 %v788_v0 }
  0x8c   :  { %594 = vmatpush3.bf16.msra.mxu0 %v632_v21 }
  0x8d   :  { %595 = vmatprep.subr.bf16.mxu0 %v788_v0 }
  0x90   :  { %596 = vmatpush3.bf16.msra.mxu0 %v634_v22 }
  0x91   :  { %597 = vmatprep.subr.bf16.mxu0 %v788_v0 }
  0x94   :  { %598 = vmatpush3.bf16.msra.mxu0 %v636_v23 }
  0x95   :  { %599 = vmatprep.subr.bf16.mxu0 %v788_v0 }
  0x98   :  { %600 = vmatpush3.bf16.msra.mxu0 %v638_v24 }
  0x9b   :  { %602 = vmatmul.mubr.bf16.vlgmr.msra.gmra.mrb[4].mxu0 %v640_v26 }
 0x14e   :  { %v207_v27 = vpop.f32.mrb[0].mxu0 }
 0x14f   :  { %v563_v28 = vpop.f32.mrb[1].mxu0 }
 0x150   :  { %v210_v29 = vpop.f32.mrb[2].mxu0 }
 0x151   :  { %v223_v30 = vpack.c.bf16 %v210_v29, %v207_v27  ;;  %v564_v31 = vpop.f32.mrb[3].mxu0 }
 0x153   :  { %582 = vmatmul.mubr.bf16.vlgmr.msra.gmra.mrb[0].mxu1 %v223_v30 }
 0x16e   :  { %v435_v32 = vpop.f32.mrb[4].mxu0 }
 0x16f   :  { %v603_v33 = vpop.f32.mrb[5].mxu0 }
 0x170   :  { %v438_v34 = vpop.f32.mrb[6].mxu0 }
 0x171   :  { %v604_v35 = vpop.f32.mrb[7].mxu0 }
 0x226   :  { %v340_v36 = vpop.f32.mrb[0].mxu1 }
 0x227   :  { %v436_v38 = vadd.f32 %v435_v32, %v340_v36  ;;  %v583_v39 = vpop.f32.mrb[1].mxu1 }
 0x228   :  { %v343_v40 = vpop.f32.mrb[2].mxu1 }
 0x229   :  { %v449_v41 = vadd.f32 %v508_v37, %v436_v38  ;;  %v439_v42 = vadd.f32 %v438_v34, %v343_v40  ;;  %v584_v43 = vpop.f32.mrb[3].mxu1 }
 0x22b   :  { %v450_v44 = vadd.f32 %v508_v37, %v439_v42  ;;  %v451_v45 = vmax.f32 %v449_v41, 0.0 }
 0x22d   :  { %v452_v46 = vmax.f32 %v450_v44, 0.0 }
 0x22f   :  { %v516_v47 = vpack.c.bf16 %v452_v46, %v451_v45 }
 0x231   :  { %517 = vst [vmem:[#allocation12] sm:$0xff] %v516_v47  }
 0x232   :  { %762 = shalt.err (!%p759_p2)
}
 0x233   :  { %s763_s14 = scalar_lea.hbm %s969_s6, 128 }
 0x234   :  { %p764_p3 = scmp.ne.s32.totalorder %s969_s6, %s763_s14  ;;  %p767_p4 = scmp.lt.u32.totalorder %s763_s14, %s969_s6 }
 0x236   :  { %p769_p5 = pnand %p767_p4, %p764_p3 }
 0x238   :  { %772 = shalt.err (!%p769_p5)
}
 0x239   :  { %474 = dma.vmem_to_hbm [thread:$0]  %s469_s24, 128, %s969_s6, [#allocation5], %s783_s9, %s783_s9, %s784_s10  }
 0x23a   :  { %779 = dma.done.wait [#allocation5], 128  }
 0x23b   :  { %780 = vsyncadd [#allocation5], 4294967168 }
 0x23c   :  { %478 = vsyncpa [#allocation4], 1 }
 0x23d   :  { %479 = vsyncpa [#allocation7], 1 }
 0x23e   :  { %480 = vsyncpa [#allocation10], 1 }
 0x23f   :  { %481 = vsyncpa [#allocation5], 1 }

</bundles_post_ra>
